<compile_context>
chip_gen: v7x
topology: tpu7x:2x2x1
jax: 0.10.0
libtpu: 0.0.40
codegen_flags: <defaults>
</compile_context>

<pallas_src>
import functools

import jax
import jax.numpy as jnp
from jax.experimental import pallas as pl
from jax.experimental.pallas import tpu as pltpu

_LANE = 128  # lane width of a vreg; output/hidden feature dims are padded to this


def _round_up(n, m):
    return ((n + m - 1) // m) * m


def _sigmoid_f32(z):
    # sigmoid(z) == 0.5 * (tanh(z / 2) + 1): a single EUP op (tanh) per element;
    # the scale/shift goes to the VALU, which has slack.
    return 0.5 * (jnp.tanh(0.5 * z) + 1.0)


def _two_layer_kernel(x_ref, w1_ref, b1_ref, w2_ref, b2_ref, w3_ref, b3_ref,
                      o_ref):
    """One batch tile of sigmoid(sigmoid(sigmoid(x@W1+b1)@W2+b2)@W3+b3)."""
    x = x_ref[...].astype(jnp.bfloat16)  # f32 (tb, num_inputs) -> bf16 for the MXU

    h = jnp.dot(x, w1_ref[...], preferred_element_type=jnp.float32)
    h = _sigmoid_f32(h + b1_ref[...]).astype(jnp.bfloat16)

    h1 = jnp.dot(h, w2_ref[...], preferred_element_type=jnp.float32)
    h1 = _sigmoid_f32(h1 + b2_ref[...]).astype(jnp.bfloat16)

    y = jnp.dot(h1, w3_ref[...], preferred_element_type=jnp.float32)
    y = _sigmoid_f32(y + b3_ref[...])

    o_ref[...] = y.astype(o_ref.dtype)


def _pad2(a, rows, cols, dtype):
    """Zero-padded (rows, cols) copy of a 1-D/2-D array, cast to dtype.

    Zero fill is load-bearing: padded W2/W3 *rows* must be exactly zero so the
    sigmoid(0)=0.5 activations living in padded hidden lanes contribute nothing.
    """
    a = a.reshape((1, -1)) if a.ndim == 1 else a
    out = jnp.zeros((rows, cols), dtype)
    return out.at[: a.shape[0], : a.shape[1]].set(a.astype(dtype))


def prepare_params(w1, b1, w2, b2, w3, b3):
    """One-time parameter prep: pad hidden/output dims to 128 lanes, cast weights to
    bf16.  Done once outside the jit'd forward so per-call work is only the kernel."""
    num_inputs, num_h1 = w1.shape
    num_h2 = w2.shape[1]
    num_out = w3.shape[1]
    h1_p = _round_up(num_h1, _LANE)
    h2_p = _round_up(num_h2, _LANE)
    out_p = _round_up(num_out, _LANE)

    w1p = _pad2(w1, num_inputs, h1_p, jnp.bfloat16)  # contraction dim stays unpadded
    w2p = _pad2(w2, h1_p, h2_p, jnp.bfloat16)
    w3p = _pad2(w3, h2_p, out_p, jnp.bfloat16)
    b1p = _pad2(b1, 1, h1_p, jnp.float32)
    b2p = _pad2(b2, 1, h2_p, jnp.float32)
    b3p = _pad2(b3, 1, out_p, jnp.float32)
    return w1p, b1p, w2p, b2p, w3p, b3p


@functools.partial(jax.jit, static_argnames=("num_out", "tile_b"))
def two_layer_forward(x, w1p, b1p, w2p, b2p, w3p, b3p, *, num_out, tile_b=512):
    """Forward pass matching the PyTorch TwoLayer module.

    x: [batch, num_inputs] f32 (unpadded).
    w*p/b*p: pre-padded / pre-cast params from prepare_params().
    """
    batch, num_inputs = x.shape
    assert w1p.shape[0] == num_inputs
    h1_p = w1p.shape[1]
    h2_p = w2p.shape[1]
    out_p = w3p.shape[1]

    # Batch tile: as big as allowed (multiple of 16 for bf16 sublane packing), but
    # capped so the grid has >= 4 steps when batch allows — v7x shards the "parallel"
    # axis across 2 TensorCores and needs >= 2 steps/core to pipeline X DMA vs compute.
    tb = min(tile_b, _round_up(batch, 16))
    if batch >= 4 * 16:
        tb = min(tb, _round_up(-(-batch // 4), 16))
    tb = max(16, _round_up(tb, 16))
    batch_p = _round_up(batch, tb)
    grid = (batch_p // tb,)

    if batch_p != batch:  # pad only the batch dim (padded rows are sliced off below)
        x = jnp.pad(x, ((0, batch_p - batch), (0, 0)))

    # Weights/biases: constant block index -> DMA'd from HBM once, resident in VMEM.
    # TODO(synk): if hidden dims grow to ~8K+, switch to K-tiling (v7x VMEM is 64 MiB)
    # and single-buffer the resident blocks.
    resident = lambda shape: pl.BlockSpec(shape, lambda i: (0, 0))

    flops = 2 * batch_p * (num_inputs * h1_p + h1_p * h2_p + h2_p * out_p)
    transcendentals = batch_p * (h1_p + h2_p + out_p)
    bytes_accessed = (
        x.size * 4  # f32 X stream (unpadded lanes)
        + (w1p.size + w2p.size + w3p.size) * 2  # bf16 weights, once
        + (b1p.size + b2p.size + b3p.size) * 4  # f32 biases, once
        + batch_p * out_p * 4  # f32 output stream
    )

    out = pl.pallas_call(
        _two_layer_kernel,
        out_shape=jax.ShapeDtypeStruct((batch_p, out_p), jnp.float32),
        grid=grid,
        in_specs=[
            # X: batch-tiled f32 stream; last dim == full array dim (no lane padding).
            pl.BlockSpec((tb, num_inputs), lambda i: (i, 0)),
            resident((num_inputs, h1_p)), resident((1, h1_p)),
            resident((h1_p, h2_p)), resident((1, h2_p)),
            resident((h2_p, out_p)), resident((1, out_p)),
        ],
        out_specs=pl.BlockSpec((tb, out_p), lambda i: (i, 0)),
        compiler_params=pltpu.CompilerParams(
            # v7x: shard batch tiles over its 2 TensorCores; harmless on v5e/v6e.
            dimension_semantics=("parallel",),
        ),
        cost_estimate=pl.CostEstimate(
            flops=flops,
            transcendentals=transcendentals,
            bytes_accessed=bytes_accessed,
        ),
    )(x, w1p, b1p, w2p, b2p, w3p, b3p)

    return out[:batch, :num_out]


def init_linear_params(key, fan_in, fan_out):
    """Deterministic init mimicking nn.Linear: U(-1/sqrt(fan_in), 1/sqrt(fan_in)).
    Weight is stored as [fan_in, fan_out] (already transposed for x @ W)."""
    kw, kb = jax.random.split(key)
    bound = 1.0 / jnp.sqrt(jnp.float32(fan_in))
    w = jax.random.uniform(kw, (fan_in, fan_out), jnp.float32, -bound, bound)
    b = jax.random.uniform(kb, (1, fan_out), jnp.float32, -bound, bound)
    return w, b


if __name__ == "__main__":
    # Small shapes consistent with the module; batch=512 with a 128-row tile gives a
    # 4-step batch grid (2 pipelined steps per TensorCore on v7x).
    batch, num_inputs, num_hidden1, num_hidden2, num_out = 512, 16, 32, 32, 8

    key = jax.random.PRNGKey(0)
    kx, k1, k2, k3 = jax.random.split(key, 4)

    x = jax.random.normal(kx, (batch, num_inputs), jnp.float32)
    w1, b1 = init_linear_params(k1, num_inputs, num_hidden1)
    w2, b2 = init_linear_params(k2, num_hidden1, num_hidden2)
    w3, b3 = init_linear_params(k3, num_hidden2, num_out)

    # One-time parameter prep (pad + bf16 cast), outside the jit'd forward.
    params = prepare_params(w1, b1, w2, b2, w3, b3)
    params = jax.block_until_ready(params)

    y = two_layer_forward(x, *params, num_out=num_out)
    y = jax.block_until_ready(y)

    # Pure-JAX f32 reference (kernel uses bf16 MXU inputs, hence the tolerance).
    ref = jax.nn.sigmoid(
        jax.nn.sigmoid(
            jax.nn.sigmoid(x @ w1 + b1) @ w2 + b2) @ w3 + b3)
    assert y.shape == (batch, num_out)
    assert jnp.allclose(y, ref, atol=2e-2, rtol=0.0), float(
        jnp.max(jnp.abs(y - ref)))

    print("KERNEL_OK")
</pallas_src>

<mosaic_0001>
module attributes {stable_mosaic.version = 11 : i64} {
  func.func @_two_layer_kernel(%arg0: i32, %arg1: memref<128x16xf32, #tpu.memory_space<vmem>>, %arg2: memref<16x128xbf16, #tpu.memory_space<vmem>>, %arg3: memref<1x128xf32, #tpu.memory_space<vmem>>, %arg4: memref<128x128xbf16, #tpu.memory_space<vmem>>, %arg5: memref<1x128xf32, #tpu.memory_space<vmem>>, %arg6: memref<128x128xbf16, #tpu.memory_space<vmem>>, %arg7: memref<1x128xf32, #tpu.memory_space<vmem>>, %arg8: memref<128x128xf32, #tpu.memory_space<vmem>>) attributes {dimension_semantics = [#tpu.dimension_semantics<parallel>], iteration_bounds = array<i64: 4>, scalar_prefetch = 0 : i64, scratch_operands = 0 : i64, tpu.core_type = #tpu.core_type<tc>, window_params = [{transform_indices = @transform_0, window_bounds = array<i64: 128, 16>}, {pipeline_mode = #tpu.pipeline_mode<synchronous>, transform_indices = @transform_1, window_bounds = array<i64: 16, 128>}, {pipeline_mode = #tpu.pipeline_mode<synchronous>, transform_indices = @transform_2, window_bounds = array<i64: 1, 128>}, {pipeline_mode = #tpu.pipeline_mode<synchronous>, transform_indices = @transform_3, window_bounds = array<i64: 128, 128>}, {pipeline_mode = #tpu.pipeline_mode<synchronous>, transform_indices = @transform_4, window_bounds = array<i64: 1, 128>}, {pipeline_mode = #tpu.pipeline_mode<synchronous>, transform_indices = @transform_5, window_bounds = array<i64: 128, 128>}, {pipeline_mode = #tpu.pipeline_mode<synchronous>, transform_indices = @transform_6, window_bounds = array<i64: 1, 128>}, {transform_indices = @transform_7, window_bounds = array<i64: 128, 128>}]} {
    %c0 = arith.constant 0 : index
    %c0_0 = arith.constant 0 : index
    %0 = vector.load %arg1[%c0, %c0_0] : memref<128x16xf32, #tpu.memory_space<vmem>>, vector<128x16xf32>
    %1 = arith.truncf %0 : vector<128x16xf32> to vector<128x16xbf16>
    %c0_1 = arith.constant 0 : index
    %c0_2 = arith.constant 0 : index
    %2 = vector.load %arg2[%c0_1, %c0_2] : memref<16x128xbf16, #tpu.memory_space<vmem>>, vector<16x128xbf16>
    %cst = arith.constant dense<0.000000e+00> : vector<128x128xf32>
    %3 = tpu.matmul %1, %2, %cst {dimension_numbers = #tpu.dot_dimension_numbers<[1], [0], [0], [1], [0, 0, 1, 1], [], []>} : vector<128x16xbf16>, vector<16x128xbf16>, vector<128x128xf32> -> vector<128x128xf32>
    %c0_3 = arith.constant 0 : index
    %c0_4 = arith.constant 0 : index
    %4 = vector.load %arg3[%c0_3, %c0_4] : memref<1x128xf32, #tpu.memory_space<vmem>>, vector<1x128xf32>
    %5 = vector.broadcast %4 : vector<1x128xf32> to vector<128x128xf32>
    %6 = arith.addf %3, %5 : vector<128x128xf32>
    %cst_5 = arith.constant 5.000000e-01 : f32
    %7 = vector.broadcast %cst_5 : f32 to vector<128x128xf32>
    %8 = arith.mulf %7, %6 : vector<128x128xf32>
    %9 = math.tanh %8 : vector<128x128xf32>
    %cst_6 = arith.constant 1.000000e+00 : f32
    %10 = vector.broadcast %cst_6 : f32 to vector<128x128xf32>
    %11 = arith.addf %9, %10 : vector<128x128xf32>
    %cst_7 = arith.constant 5.000000e-01 : f32
    %12 = vector.broadcast %cst_7 : f32 to vector<128x128xf32>
    %13 = arith.mulf %12, %11 : vector<128x128xf32>
    %14 = arith.truncf %13 : vector<128x128xf32> to vector<128x128xbf16>
    %c0_8 = arith.constant 0 : index
    %c0_9 = arith.constant 0 : index
    %15 = vector.load %arg4[%c0_8, %c0_9] : memref<128x128xbf16, #tpu.memory_space<vmem>>, vector<128x128xbf16>
    %cst_10 = arith.constant dense<0.000000e+00> : vector<128x128xf32>
    %16 = tpu.matmul %14, %15, %cst_10 {dimension_numbers = #tpu.dot_dimension_numbers<[1], [0], [0], [1], [0, 0, 1, 1], [], []>} : vector<128x128xbf16>, vector<128x128xbf16>, vector<128x128xf32> -> vector<128x128xf32>
    %c0_11 = arith.constant 0 : index
    %c0_12 = arith.constant 0 : index
    %17 = vector.load %arg5[%c0_11, %c0_12] : memref<1x128xf32, #tpu.memory_space<vmem>>, vector<1x128xf32>
    %18 = vector.broadcast %17 : vector<1x128xf32> to vector<128x128xf32>
    %19 = arith.addf %16, %18 : vector<128x128xf32>
    %cst_13 = arith.constant 5.000000e-01 : f32
    %20 = vector.broadcast %cst_13 : f32 to vector<128x128xf32>
    %21 = arith.mulf %20, %19 : vector<128x128xf32>
    %22 = math.tanh %21 : vector<128x128xf32>
    %cst_14 = arith.constant 1.000000e+00 : f32
    %23 = vector.broadcast %cst_14 : f32 to vector<128x128xf32>
    %24 = arith.addf %22, %23 : vector<128x128xf32>
    %cst_15 = arith.constant 5.000000e-01 : f32
    %25 = vector.broadcast %cst_15 : f32 to vector<128x128xf32>
    %26 = arith.mulf %25, %24 : vector<128x128xf32>
    %27 = arith.truncf %26 : vector<128x128xf32> to vector<128x128xbf16>
    %c0_16 = arith.constant 0 : index
    %c0_17 = arith.constant 0 : index
    %28 = vector.load %arg6[%c0_16, %c0_17] : memref<128x128xbf16, #tpu.memory_space<vmem>>, vector<128x128xbf16>
    %cst_18 = arith.constant dense<0.000000e+00> : vector<128x128xf32>
    %29 = tpu.matmul %27, %28, %cst_18 {dimension_numbers = #tpu.dot_dimension_numbers<[1], [0], [0], [1], [0, 0, 1, 1], [], []>} : vector<128x128xbf16>, vector<128x128xbf16>, vector<128x128xf32> -> vector<128x128xf32>
    %c0_19 = arith.constant 0 : index
    %c0_20 = arith.constant 0 : index
    %30 = vector.load %arg7[%c0_19, %c0_20] : memref<1x128xf32, #tpu.memory_space<vmem>>, vector<1x128xf32>
    %31 = vector.broadcast %30 : vector<1x128xf32> to vector<128x128xf32>
    %32 = arith.addf %29, %31 : vector<128x128xf32>
    %cst_21 = arith.constant 5.000000e-01 : f32
    %33 = vector.broadcast %cst_21 : f32 to vector<128x128xf32>
    %34 = arith.mulf %33, %32 : vector<128x128xf32>
    %35 = math.tanh %34 : vector<128x128xf32>
    %cst_22 = arith.constant 1.000000e+00 : f32
    %36 = vector.broadcast %cst_22 : f32 to vector<128x128xf32>
    %37 = arith.addf %35, %36 : vector<128x128xf32>
    %cst_23 = arith.constant 5.000000e-01 : f32
    %38 = vector.broadcast %cst_23 : f32 to vector<128x128xf32>
    %39 = arith.mulf %38, %37 : vector<128x128xf32>
    %c0_24 = arith.constant 0 : index
    %c0_25 = arith.constant 0 : index
    %40 = vector.load %arg8[%c0_24, %c0_25] : memref<128x128xf32, #tpu.memory_space<vmem>>, vector<128x128xf32>
    tpu.vector_store %arg8[%c0_24, %c0_25], %39 {strides = array<i32>} : memref<128x128xf32, #tpu.memory_space<vmem>>, vector<128x128xf32>,
    return
  }
  func.func @transform_0(%arg0: i32) -> (i32, i32) {
    %c0_i32 = arith.constant 0 : i32
    %c0_i32_0 = arith.constant 0 : i32
    return %arg0, %c0_i32 : i32, i32
  }
  func.func @transform_1(%arg0: i32) -> (i32, i32) {
    %c0_i32 = arith.constant 0 : i32
    %c0_i32_0 = arith.constant 0 : i32
    %c0_i32_1 = arith.constant 0 : i32
    return %c0_i32, %c0_i32_0 : i32, i32
  }
  func.func @transform_2(%arg0: i32) -> (i32, i32) {
    %c0_i32 = arith.constant 0 : i32
    %c0_i32_0 = arith.constant 0 : i32
    %c0_i32_1 = arith.constant 0 : i32
    return %c0_i32, %c0_i32_0 : i32, i32
  }
  func.func @transform_3(%arg0: i32) -> (i32, i32) {
    %c0_i32 = arith.constant 0 : i32
    %c0_i32_0 = arith.constant 0 : i32
    %c0_i32_1 = arith.constant 0 : i32
    return %c0_i32, %c0_i32_0 : i32, i32
  }
  func.func @transform_4(%arg0: i32) -> (i32, i32) {
    %c0_i32 = arith.constant 0 : i32
    %c0_i32_0 = arith.constant 0 : i32
    %c0_i32_1 = arith.constant 0 : i32
    return %c0_i32, %c0_i32_0 : i32, i32
  }
  func.func @transform_5(%arg0: i32) -> (i32, i32) {
    %c0_i32 = arith.constant 0 : i32
    %c0_i32_0 = arith.constant 0 : i32
    %c0_i32_1 = arith.constant 0 : i32
    return %c0_i32, %c0_i32_0 : i32, i32
  }
  func.func @transform_6(%arg0: i32) -> (i32, i32) {
    %c0_i32 = arith.constant 0 : i32
    %c0_i32_0 = arith.constant 0 : i32
    %c0_i32_1 = arith.constant 0 : i32
    return %c0_i32, %c0_i32_0 : i32, i32
  }
  func.func @transform_7(%arg0: i32) -> (i32, i32) {
    %c0_i32 = arith.constant 0 : i32
    %c0_i32_0 = arith.constant 0 : i32
    return %arg0, %c0_i32 : i32, i32
  }
}

</mosaic_0001>

<bundles_post_ra>
// kernel: two_layer_forward.1
= control target key start
LH: loop header
LB: loop body
LE: loop exit
PB: predicated region body
PF: predicated region fallthrough
CT: control target
= control target key end

     0   :  { %s1391_s24 = smov 0   ;;  %s1573_s0 = inlined_call_operand.vmem [shape: f32[512,16], index: 0, kind: input, shape index: {}]   ;;  %s1574_s1 = inlined_call_operand.vmem [shape: bf16[16,128], index: 1, kind: input, shape index: {}]   ;;  %s1575_s2 = inlined_call_operand.vmem [shape: f32[1,128], index: 2, kind: input, shape index: {}]   ;;  %s1576_s3 = inlined_call_operand.vmem [shape: bf16[128,128], index: 3, kind: input, shape index: {}]   ;;  %s1577_s4 = inlined_call_operand.vmem [shape: f32[1,128], index: 4, kind: input, shape index: {}]   ;;  %s1578_s5 = inlined_call_operand.vmem [shape: bf16[128,128], index: 5, kind: input, shape index: {}]   ;;  %s1579_s6 = inlined_call_operand.vmem [shape: f32[1,128], index: 6, kind: input, shape index: {}]   ;;  %s1580_s7 = inlined_call_operand.vmem [shape: f32[512,128], index: 7, kind: output, shape index: {}]  }
   0x1 LB: > { %s1060_s25 = sadd.s32 4294967295, %s1349_s24   ;;  %p1064_p0 = scmp.ge.s32.totalorder %s1349_s24, 1  ;;  %s1349_s24 = sphi %s1391_s24, %s17_s24  }
   0x2   : > { %p238_p1 = scmp.lt.s32.totalorder %s1349_s24, 5 }
   0x4   : > { %p239_p2 = pnand %p1064_p0, %p238_p1 }
   0x5   : > { %v1230_v0 = vld [vmem:[%s1574_s1] sm:$0xff] (!%p239_p2)   ;;  %s1065_s28 = sshll.u32 (!%p239_p2), %s1060_s25, 4  ;;  %v1232_v2 = vld [vmem:[%s1576_s3 + $0x8] sm:$0xff] (!%p239_p2)   ;;  %vm322_vm0 = vcmask (!%p239_p2), 130048   ;;  %v1233_v27 = vld [vmem:[%s1576_s3 + $0x10] sm:$0xff] (!%p239_p2)  }
   0x6   : > { %242 = sbr.rel (%p239_p2) target bundleno = 753 (0x2f1), region = 48  ;;  %p271_p3 = scmp.lt.s32.totalorder (!%p239_p2), %s1065_s28, 63  ;;  %1140 = vmatprep.subr.bf16.mxu0 (!%p239_p2), %v1230_v0  ;;  %v1231_v1 = vld [vmem:[%s1576_s3] sm:$0xff] (!%p239_p2)   ;;  %v1234_v28 = vld [vmem:[%s1576_s3 + $0x18] sm:$0xff] (!%p239_p2)   ;;  %v1236_v30 = vld [vmem:[%s1576_s3 + $0x28] sm:$0xff] (!%p239_p2)  }
   0x7   : > { %1141 = vmatpush3.bf16.msra.mxu0 (!%p239_p2), %v1230_v0  ;;  %1158 = vmatprep.subr.bf16.mxu1 (!%p239_p2), %v1231_v1  ;;  %v1235_v29 = vld [vmem:[%s1576_s3 + $0x20] sm:$0xff] (!%p239_p2)   ;;  %v1237_v31 = vld [vmem:[%s1576_s3 + $0x30] sm:$0xff] (!%p239_p2)   ;;  %v1238_v32 = vld [vmem:[%s1576_s3 + $0x38] sm:$0xff] (!%p239_p2)  }
   0x8   : > { %1159 = vmatpush3.bf16.msra.mxu1 (!%p239_p2), %v1231_v1  ;;  %v1239_v33 = vld [vmem:[%s1578_s5] sm:$0xff] (!%p239_p2)   ;;  %v1240_v34 = vld [vmem:[%s1578_s5 + $0x8] sm:$0xff] (!%p239_p2)  }
   0x9   : > { %1160 = vmatprep.subr.bf16.mxu1 (!%p239_p2), %v1232_v2  ;;  %1190 = vmatprep.subr.bf16.mxu0 (!%p239_p2), %v1239_v33  ;;  %v1469_v35 = vld [vmem:[%s1575_s2] ss:$0 sm:$0xff] (!%p239_p2) }
   0xc   : > { %1161 = vmatpush3.bf16.msra.mxu1 (!%p239_p2), %v1232_v2 }
   0xd   : > { %s1582_s28 = smov (!%p271_p3, %s1065_s28), 63  ;;  %1162 = vmatprep.subr.bf16.mxu1 %v1233_v27 }
   0xe   : > { %s1066_s10 = sshll.u32 %s1582_s28, 3 }
   0xf   : > { %s1416_s13 = scalar_lea.vmem %s1573_s0, %s1066_s10  ;;  %s1544_s9 = scalar_lea.vmem %s1580_s7, %s1066_s10 }
  0x10   : > { %v283_v3 = vld [vmem:[%s1416_s13] sm:$0xff]  ;;  %v284_v4 = vld [vmem:[%s1416_s13 + $0x8] sm:$0xff]  ;;  %v285_v5 = vld [vmem:[%s1416_s13 + $0x10] sm:$0xff]  ;;  %1163 = vmatpush3.bf16.msra.mxu1 %v1233_v27 }
  0x11   : > { %v299_v6 = vpack.c.bf16 %v284_v4, %v283_v3  ;;  %v286_v7 = vld [vmem:[%s1416_s13 + $0x18] sm:$0xff]  ;;  %v287_v8 = vld [vmem:[%s1416_s13 + $0x20] sm:$0xff]  ;;  %v288_v9 = vld [vmem:[%s1416_s13 + $0x28] sm:$0xff]  ;;  %1164 = vmatprep.subr.bf16.mxu1 %v1234_v28 }
  0x12   : > { %v300_v10 = vpack.c.bf16 %v286_v7, %v285_v5  ;;  %v301_v11 = vpack.c.bf16 %v288_v9, %v287_v8  ;;  %v289_v12 = vld [vmem:[%s1416_s13 + $0x30] sm:$0xff]  ;;  %v290_v13 = vld [vmem:[%s1416_s13 + $0x38] sm:$0xff]  ;;  %v291_v14 = vld [vmem:[%s1416_s13 + $0x40] sm:$0xff] }
  0x13   : > { %1142 = vmatprep.mubr.msk.bf16.mxu0 %vm322_vm0, %v299_v6  ;;  %v292_v15 = vld [vmem:[%s1416_s13 + $0x48] sm:$0xff]  ;;  %v302_v16 = vpack.c.bf16 %v290_v13, %v289_v12  ;;  %v293_v18 = vld [vmem:[%s1416_s13 + $0x50] sm:$0xff]  ;;  %v294_v19 = vld [vmem:[%s1416_s13 + $0x58] sm:$0xff] }
  0x14   : > { %1143 = vmatmul.mubr.msk.bf16.vlgmr.msra.gmra.mrb[0].mxu0 %vm322_vm0, %v300_v10  ;;  %v303_v17 = vpack.c.bf16 %v292_v15, %v291_v14  ;;  %v295_v20 = vld [vmem:[%s1416_s13 + $0x60] sm:$0xff]  ;;  %v296_v21 = vld [vmem:[%s1416_s13 + $0x68] sm:$0xff]  ;;  %v304_v22 = vpack.c.bf16 %v294_v19, %v293_v18  ;;  %v297_v24 = vld [vmem:[%s1416_s13 + $0x70] sm:$0xff]  ;;  %1165 = vmatpush3.bf16.msra.mxu1 %v1234_v28 }
  0x15   : > { %1146 = vmatprep.mubr.msk.bf16.mxu0 %vm322_vm0, %v301_v11  ;;  %v305_v23 = vpack.c.bf16 %v296_v21, %v295_v20  ;;  %v298_v25 = vld [vmem:[%s1416_s13 + $0x78] sm:$0xff]  ;;  %1166 = vmatprep.subr.bf16.mxu1 %v1235_v29 }
  0x16   : > { %v306_v26 = vpack.c.bf16 %v298_v25, %v297_v24  ;;  %1191 = vmatpush3.bf16.msra.mxu0 %v1239_v33 }
  0x17   : > { %1192 = vmatprep.subr.bf16.mxu0 %v1240_v34 }
  0x18   : > { %1167 = vmatpush3.bf16.msra.mxu1 %v1235_v29 }
  0x19   : > { %1168 = vmatprep.subr.bf16.mxu1 %v1236_v30 }
  0x1a   : > { %1193 = vmatpush3.bf16.msra.mxu0 %v1240_v34 }
  0x1c   : > { %1147 = vmatmul.mubr.msk.bf16.gmra.mrb[4].mxu0 %vm322_vm0, %v302_v16  ;;  %1169 = vmatpush3.bf16.msra.mxu1 %v1236_v30 }
  0x1d   : > { %1150 = vmatprep.mubr.msk.bf16.mxu0 %vm322_vm0, %v303_v17  ;;  %1170 = vmatprep.subr.bf16.mxu1 %v1237_v31 }
  0x20   : > { %1171 = vmatpush3.bf16.msra.mxu1 %v1237_v31 }
  0x21   : > { %1172 = vmatprep.subr.bf16.mxu1 %v1238_v32 }
  0x24   : > { %1151 = vmatmul.mubr.msk.bf16.gmra.mrb[8].mxu0 %vm322_vm0, %v304_v22  ;;  %1173 = vmatpush3.bf16.msra.mxu1 %v1238_v32 }
  0x25   : > { %1154 = vmatprep.mubr.msk.bf16.mxu0 %vm322_vm0, %v305_v23 }
  0x2c   : > { %1155 = vmatmul.mubr.msk.bf16.gmra.mrb[12].mxu0 %vm322_vm0, %v306_v26 }
  0xe7   : > { %v1144_v36 = vpop.f32.mrb[0].mxu0 }
  0xe8   : > { %v390_v37 = vadd.f32 %v1144_v36, %v1469_v35  ;;  %v381_v38 = vpop.f32.mrb[1].mxu0 }
  0xe9   : > { %v382_v39 = vadd.f32 %v1469_v35, %v381_v38  ;;  %v1145_v40 = vpop.f32.mrb[2].mxu0 }
  0xea   : > { %v446_v41 = vmul.f32 0.5, %v390_v37  ;;  %v393_v42 = vadd.f32 %v1145_v40, %v1469_v35  ;;  %v384_v43 = vpop.f32.mrb[3].mxu0 }
  0xeb   : > { %v444_v44 = vmul.f32 0.5, %v382_v39  ;;  %v385_v45 = vadd.f32 %v1469_v35, %v384_v43 }
  0xec   : > { %1247 = vtanh.f32 %v446_v41  ;;  %v447_v46 = vmul.f32 0.5, %v393_v42 }
  0xed   : > { %1249 = vtanh.f32 %v444_v44  ;;  %v445_v47 = vmul.f32 0.5, %v385_v45 }
  0xee   : > { %1251 = vtanh.f32 %v447_v46 }
  0xef   : > { %1253 = vtanh.f32 %v445_v47  ;;  %v1148_v48 = vpop.f32.mrb[4].mxu0 }
  0xf0   : > { %v406_v49 = vadd.f32 %v1148_v48, %v1469_v35  ;;  %v397_v50 = vpop.f32.mrb[5].mxu0 }
  0xf1   : > { %v398_v51 = vadd.f32 %v1469_v35, %v397_v50  ;;  %v1149_v52 = vpop.f32.mrb[6].mxu0 }
  0xf2   : > { %v450_v53 = vmul.f32 0.5, %v406_v49  ;;  %v409_v54 = vadd.f32 %v1149_v52, %v1469_v35  ;;  %v400_v55 = vpop.f32.mrb[7].mxu0 }
  0xf3   : > { %v448_v56 = vmul.f32 0.5, %v398_v51  ;;  %v401_v57 = vadd.f32 %v1469_v35, %v400_v55 }
  0xf4   : > { %1255 = vtanh.f32 %v450_v53  ;;  %v451_v58 = vmul.f32 0.5, %v409_v54 }
  0xf5   : > { %1257 = vtanh.f32 %v448_v56  ;;  %v449_v59 = vmul.f32 0.5, %v401_v57 }
  0xf6   : > { %v1248_v60 = vpop.eup %1247  ;;  %1259 = vtanh.f32 %v451_v58 }
  0xf7   : > { %v1250_v61 = vpop.eup %1249  ;;  %v478_v62 = vadd.f32 1.0, %v1248_v60  ;;  %1261 = vtanh.f32 %v449_v59  ;;  %v1152_v63 = vpop.f32.mrb[8].mxu0 }
  0xf8   : > { %v1252_v0 = vpop.eup %1251  ;;  %v422_v1 = vadd.f32 %v1152_v63, %v1469_v35  ;;  %v413_v2 = vpop.f32.mrb[9].mxu0  ;;  %v476_v3 = vadd.f32 1.0, %v1250_v61 }
  0xf9   : > { %v1254_v4 = vpop.eup %1253  ;;  %v479_v5 = vadd.f32 1.0, %v1252_v0  ;;  %v414_v6 = vadd.f32 %v1469_v35, %v413_v2  ;;  %v1153_v7 = vpop.f32.mrb[10].mxu0  ;;  %v494_v12 = vmul.f32 0.5, %v478_v62 }
  0xfa   : > { %v454_v8 = vmul.f32 0.5, %v422_v1  ;;  %v425_v9 = vadd.f32 %v1153_v7, %v1469_v35  ;;  %v416_v10 = vpop.f32.mrb[11].mxu0  ;;  %v477_v11 = vadd.f32 1.0, %v1254_v4  ;;  %v492_v17 = vmul.f32 0.5, %v476_v3 }
  0xfb   : > { %v495_v13 = vmul.f32 0.5, %v479_v5  ;;  %v452_v14 = vmul.f32 0.5, %v414_v6  ;;  %v417_v15 = vadd.f32 %v1469_v35, %v416_v10 }
  0xfc   : > { %1263 = vtanh.f32 %v454_v8  ;;  %v455_v16 = vmul.f32 0.5, %v425_v9  ;;  %v493_v18 = vmul.f32 0.5, %v477_v11 }
  0xfd   : > { %1265 = vtanh.f32 %v452_v14  ;;  %v453_v19 = vmul.f32 0.5, %v417_v15  ;;  %v509_v20 = vpack.c.bf16 %v495_v13, %v494_v12  ;;  %v1241_v12 = vld [vmem:[%s1578_s5 + $0x10] sm:$0xff]   ;;  %v1242_v13 = vld [vmem:[%s1578_s5 + $0x18] sm:$0xff]   ;;  %v1243_v14 = vld [vmem:[%s1578_s5 + $0x20] sm:$0xff]  }
  0xfe   : > { %v1256_v21 = vpop.eup %1255  ;;  %1267 = vtanh.f32 %v455_v16  ;;  %v508_v22 = vpack.c.bf16 %v493_v18, %v492_v17  ;;  %1194 = vmatprep.subr.bf16.mxu0 %v1241_v12  ;;  %v1244_v15 = vld [vmem:[%s1578_s5 + $0x28] sm:$0xff]   ;;  %v1245_v16 = vld [vmem:[%s1578_s5 + $0x30] sm:$0xff]   ;;  %v1246_v17 = vld [vmem:[%s1578_s5 + $0x38] sm:$0xff]  }
  0xff   : > { %v1258_v23 = vpop.eup %1257  ;;  %v482_v24 = vadd.f32 1.0, %v1256_v21  ;;  %1269 = vtanh.f32 %v453_v19  ;;  %v1156_v25 = vpop.f32.mrb[12].mxu0  ;;  %1195 = vmatpush3.bf16.msra.mxu0 %v1241_v12  ;;  %v1508_v18 = vld [vmem:[%s1577_s4] ss:$0 sm:$0xff] }
 0x100   : > { %v1260_v26 = vpop.eup %1259  ;;  %v480_v27 = vadd.f32 1.0, %v1258_v23  ;;  %v438_v28 = vadd.f32 %v1156_v25, %v1469_v35  ;;  %v429_v29 = vpop.f32.mrb[13].mxu0  ;;  %1174 = vmatprep.mubr.bf16.mxu1 %v508_v22  ;;  %1196 = vmatprep.subr.bf16.mxu0 %v1242_v13 }
 0x101   : > { %v1262_v30 = vpop.eup %1261  ;;  %v483_v31 = vadd.f32 1.0, %v1260_v26  ;;  %v430_v32 = vadd.f32 %v1469_v35, %v429_v29  ;;  %v1157_v33 = vpop.f32.mrb[14].mxu0  ;;  %1175 = vmatmul.mubr.bf16.vlgmr.msra.gmra.mrb[0].mxu1 %v509_v20  ;;  %v498_v39 = vmul.f32 0.5, %v482_v24 }
 0x102   : > { %v481_v34 = vadd.f32 1.0, %v1262_v30  ;;  %v458_v36 = vmul.f32 0.5, %v438_v28  ;;  %v441_v37 = vadd.f32 %v1157_v33, %v1469_v35  ;;  %v432_v38 = vpop.f32.mrb[15].mxu0  ;;  %v496_v43 = vmul.f32 0.5, %v480_v27 }
 0x103   : > { %v499_v40 = vmul.f32 0.5, %v483_v31  ;;  %v456_v41 = vmul.f32 0.5, %v430_v32  ;;  %v433_v42 = vadd.f32 %v1469_v35, %v432_v38  ;;  %1197 = vmatpush3.bf16.msra.mxu0 %v1242_v13 }
 0x104   : > { %v497_v44 = vmul.f32 0.5, %v481_v34  ;;  %1271 = vtanh.f32 %v458_v36  ;;  %v459_v45 = vmul.f32 0.5, %v441_v37  ;;  %1198 = vmatprep.subr.bf16.mxu0 %v1243_v14 }
 0x105   : > { %1273 = vtanh.f32 %v456_v41  ;;  %v457_v46 = vmul.f32 0.5, %v433_v42  ;;  %v511_v47 = vpack.c.bf16 %v499_v40, %v498_v39 }
 0x106   : > { %v1264_v48 = vpop.eup %1263  ;;  %1275 = vtanh.f32 %v459_v45  ;;  %v510_v49 = vpack.c.bf16 %v497_v44, %v496_v43 }
 0x107   : > { %v1266_v50 = vpop.eup %1265  ;;  %v486_v51 = vadd.f32 1.0, %v1264_v48  ;;  %1277 = vtanh.f32 %v457_v46  ;;  %1199 = vmatpush3.bf16.msra.mxu0 %v1243_v14 }
 0x108   : > { %v1268_v52 = vpop.eup %1267  ;;  %v484_v53 = vadd.f32 1.0, %v1266_v50  ;;  %1178 = vmatprep.mubr.bf16.mxu1 %v510_v49  ;;  %1200 = vmatprep.subr.bf16.mxu0 %v1244_v15 }
 0x109   : > { %v1270_v54 = vpop.eup %1269  ;;  %v487_v55 = vadd.f32 1.0, %v1268_v52  ;;  %1179 = vmatmul.mubr.bf16.gmra.mrb[4].mxu1 %v511_v47  ;;  %v502_v56 = vmul.f32 0.5, %v486_v51 }
 0x10a   : > { %v485_v35 = vadd.f32 1.0, %v1270_v54  ;;  %v500_v58 = vmul.f32 0.5, %v484_v53 }
 0x10b   : > { %v503_v57 = vmul.f32 0.5, %v487_v55  ;;  %1201 = vmatpush3.bf16.msra.mxu0 %v1244_v15 }
 0x10c   : > { %v501_v59 = vmul.f32 0.5, %v485_v35  ;;  %1202 = vmatprep.subr.bf16.mxu0 %v1245_v16 }
 0x10d   : > { %v513_v60 = vpack.c.bf16 %v503_v57, %v502_v56 }
 0x10e   : > { %v1272_v61 = vpop.eup %1271  ;;  %v512_v62 = vpack.c.bf16 %v501_v59, %v500_v58 }
 0x10f   : > { %v1274_v63 = vpop.eup %1273  ;;  %v490_v0 = vadd.f32 1.0, %v1272_v61  ;;  %1203 = vmatpush3.bf16.msra.mxu0 %v1245_v16 }
 0x110   : > { %v1276_v1 = vpop.eup %1275  ;;  %v488_v2 = vadd.f32 1.0, %v1274_v63  ;;  %1182 = vmatprep.mubr.bf16.mxu1 %v512_v62  ;;  %1204 = vmatprep.subr.bf16.mxu0 %v1246_v17 }
 0x111   : > { %v1278_v3 = vpop.eup %1277  ;;  %v491_v4 = vadd.f32 1.0, %v1276_v1  ;;  %1183 = vmatmul.mubr.bf16.gmra.mrb[8].mxu1 %v513_v60  ;;  %v506_v6 = vmul.f32 0.5, %v490_v0 }
 0x112   : > { %v489_v5 = vadd.f32 1.0, %v1278_v3  ;;  %v504_v8 = vmul.f32 0.5, %v488_v2 }
 0x113   : > { %v507_v7 = vmul.f32 0.5, %v491_v4  ;;  %1205 = vmatpush3.bf16.msra.mxu0 %v1246_v17 }
 0x114   : > { %v505_v9 = vmul.f32 0.5, %v489_v5 }
 0x115   : > { %v515_v10 = vpack.c.bf16 %v507_v7, %v506_v6 }
 0x116   : > { %v514_v11 = vpack.c.bf16 %v505_v9, %v504_v8 }
 0x118   : > { %1186 = vmatprep.mubr.bf16.mxu1 %v514_v11 }
 0x119   : > { %1187 = vmatmul.mubr.bf16.gmra.mrb[12].mxu1 %v515_v10 }
 0x1d4   : > { %v1176_v19 = vpop.f32.mrb[0].mxu1 }
 0x1d5   : > { %v630_v20 = vadd.f32 %v1176_v19, %v1508_v18  ;;  %v621_v21 = vpop.f32.mrb[1].mxu1 }
 0x1d6   : > { %v622_v22 = vadd.f32 %v1508_v18, %v621_v21  ;;  %v1177_v23 = vpop.f32.mrb[2].mxu1 }
 0x1d7   : > { %v686_v24 = vmul.f32 0.5, %v630_v20  ;;  %v633_v25 = vadd.f32 %v1177_v23, %v1508_v18  ;;  %v624_v26 = vpop.f32.mrb[3].mxu1 }
 0x1d8   : > { %v684_v27 = vmul.f32 0.5, %v622_v22  ;;  %v625_v28 = vadd.f32 %v1508_v18, %v624_v26 }
 0x1d9   : > { %1279 = vtanh.f32 %v686_v24  ;;  %v687_v29 = vmul.f32 0.5, %v633_v25 }
 0x1da   : > { %1281 = vtanh.f32 %v684_v27  ;;  %v685_v30 = vmul.f32 0.5, %v625_v28 }
 0x1db   : > { %1283 = vtanh.f32 %v687_v29 }
 0x1dc   : > { %1285 = vtanh.f32 %v685_v30  ;;  %v1180_v31 = vpop.f32.mrb[4].mxu1 }
 0x1dd   : > { %v646_v32 = vadd.f32 %v1180_v31, %v1508_v18  ;;  %v637_v33 = vpop.f32.mrb[5].mxu1 }
 0x1de   : > { %v638_v34 = vadd.f32 %v1508_v18, %v637_v33  ;;  %v1181_v36 = vpop.f32.mrb[6].mxu1 }
 0x1df   : > { %v690_v37 = vmul.f32 0.5, %v646_v32  ;;  %v649_v38 = vadd.f32 %v1181_v36, %v1508_v18  ;;  %v640_v39 = vpop.f32.mrb[7].mxu1 }
 0x1e0   : > { %v688_v40 = vmul.f32 0.5, %v638_v34  ;;  %v641_v41 = vadd.f32 %v1508_v18, %v640_v39 }
 0x1e1   : > { %1287 = vtanh.f32 %v690_v37  ;;  %v691_v42 = vmul.f32 0.5, %v649_v38 }
 0x1e2   : > { %1289 = vtanh.f32 %v688_v40  ;;  %v689_v43 = vmul.f32 0.5, %v641_v41 }
 0x1e3   : > { %v1280_v44 = vpop.eup %1279  ;;  %1291 = vtanh.f32 %v691_v42 }
 0x1e4   : > { %v1282_v45 = vpop.eup %1281  ;;  %v718_v46 = vadd.f32 1.0, %v1280_v44  ;;  %1293 = vtanh.f32 %v689_v43  ;;  %v1184_v47 = vpop.f32.mrb[8].mxu1 }
 0x1e5   : > { %v1284_v48 = vpop.eup %1283  ;;  %v716_v49 = vadd.f32 1.0, %v1282_v45  ;;  %v662_v50 = vadd.f32 %v1184_v47, %v1508_v18  ;;  %v653_v51 = vpop.f32.mrb[9].mxu1 }
 0x1e6   : > { %v1286_v52 = vpop.eup %1285  ;;  %v719_v53 = vadd.f32 1.0, %v1284_v48  ;;  %v654_v54 = vadd.f32 %v1508_v18, %v653_v51  ;;  %v1185_v55 = vpop.f32.mrb[10].mxu1  ;;  %v734_v59 = vmul.f32 0.5, %v718_v46 }
 0x1e7   : > { %v717_v35 = vadd.f32 1.0, %v1286_v52  ;;  %v694_v56 = vmul.f32 0.5, %v662_v50  ;;  %v665_v57 = vadd.f32 %v1185_v55, %v1508_v18  ;;  %v656_v58 = vpop.f32.mrb[11].mxu1  ;;  %v732_v63 = vmul.f32 0.5, %v716_v49 }
 0x1e8   : > { %v735_v60 = vmul.f32 0.5, %v719_v53  ;;  %v692_v61 = vmul.f32 0.5, %v654_v54  ;;  %v657_v62 = vadd.f32 %v1508_v18, %v656_v58 }
 0x1e9   : > { %v733_v0 = vmul.f32 0.5, %v717_v35  ;;  %1295 = vtanh.f32 %v694_v56  ;;  %v695_v1 = vmul.f32 0.5, %v665_v57 }
 0x1ea   : > { %v749_v2 = vpack.c.bf16 %v735_v60, %v734_v59  ;;  %1297 = vtanh.f32 %v692_v61  ;;  %v693_v3 = vmul.f32 0.5, %v657_v62  ;;  %v1529_v59 = vld [vmem:[%s1579_s6] ss:$0 sm:$0xff] }
 0x1eb   : > { %v1288_v4 = vpop.eup %1287  ;;  %1299 = vtanh.f32 %v695_v1  ;;  %v748_v5 = vpack.c.bf16 %v733_v0, %v732_v63 }
 0x1ec   : > { %v1290_v6 = vpop.eup %1289  ;;  %v722_v7 = vadd.f32 1.0, %v1288_v4  ;;  %1301 = vtanh.f32 %v693_v3  ;;  %v1188_v8 = vpop.f32.mrb[12].mxu1 }
 0x1ed   : > { %v1292_v9 = vpop.eup %1291  ;;  %v720_v10 = vadd.f32 1.0, %v1290_v6  ;;  %v678_v11 = vadd.f32 %v1188_v8, %v1508_v18  ;;  %v669_v12 = vpop.f32.mrb[13].mxu1  ;;  %1206 = vmatprep.mubr.bf16.mxu0 %v748_v5 }
 0x1ee   : > { %v1294_v13 = vpop.eup %1293  ;;  %v723_v14 = vadd.f32 1.0, %v1292_v9  ;;  %v670_v15 = vadd.f32 %v1508_v18, %v669_v12  ;;  %v1189_v16 = vpop.f32.mrb[14].mxu1  ;;  %1207 = vmatmul.mubr.bf16.vlgmr.msra.gmra.mrb[16].mxu0 %v749_v2  ;;  %v738_v22 = vmul.f32 0.5, %v722_v7 }
 0x1ef   : > { %v721_v17 = vadd.f32 1.0, %v1294_v13  ;;  %v698_v19 = vmul.f32 0.5, %v678_v11  ;;  %v681_v20 = vadd.f32 %v1189_v16, %v1508_v18  ;;  %v672_v21 = vpop.f32.mrb[15].mxu1  ;;  %v736_v26 = vmul.f32 0.5, %v720_v10 }
 0x1f0   : > { %v739_v23 = vmul.f32 0.5, %v723_v14  ;;  %v696_v24 = vmul.f32 0.5, %v670_v15  ;;  %v673_v25 = vadd.f32 %v1508_v18, %v672_v21 }
 0x1f1   : > { %v737_v27 = vmul.f32 0.5, %v721_v17  ;;  %1303 = vtanh.f32 %v698_v19  ;;  %v699_v28 = vmul.f32 0.5, %v681_v20 }
 0x1f2   : > { %1305 = vtanh.f32 %v696_v24  ;;  %v697_v29 = vmul.f32 0.5, %v673_v25  ;;  %v751_v30 = vpack.c.bf16 %v739_v23, %v738_v22 }
 0x1f3   : > { %v1296_v31 = vpop.eup %1295  ;;  %1307 = vtanh.f32 %v699_v28  ;;  %v750_v32 = vpack.c.bf16 %v737_v27, %v736_v26 }
 0x1f4   : > { %v1298_v33 = vpop.eup %1297  ;;  %v726_v34 = vadd.f32 1.0, %v1296_v31  ;;  %1309 = vtanh.f32 %v697_v29 }
 0x1f5   : > { %v1300_v36 = vpop.eup %1299  ;;  %v724_v37 = vadd.f32 1.0, %v1298_v33  ;;  %1210 = vmatprep.mubr.bf16.mxu0 %v750_v32 }
 0x1f6   : > { %v1302_v38 = vpop.eup %1301  ;;  %v727_v39 = vadd.f32 1.0, %v1300_v36  ;;  %1211 = vmatmul.mubr.bf16.gmra.mrb[20].mxu0 %v751_v30  ;;  %v742_v40 = vmul.f32 0.5, %v726_v34 }
 0x1f7   : > { %v725_v18 = vadd.f32 1.0, %v1302_v38  ;;  %v740_v42 = vmul.f32 0.5, %v724_v37 }
 0x1f8   : > { %v743_v41 = vmul.f32 0.5, %v727_v39 }
 0x1f9   : > { %v741_v43 = vmul.f32 0.5, %v725_v18 }
 0x1fa   : > { %v753_v44 = vpack.c.bf16 %v743_v41, %v742_v40 }
 0x1fb   : > { %v1304_v45 = vpop.eup %1303  ;;  %v752_v46 = vpack.c.bf16 %v741_v43, %v740_v42 }
 0x1fc   : > { %v1306_v47 = vpop.eup %1305  ;;  %v730_v48 = vadd.f32 1.0, %v1304_v45 }
 0x1fd   : > { %v1308_v49 = vpop.eup %1307  ;;  %v728_v50 = vadd.f32 1.0, %v1306_v47  ;;  %1214 = vmatprep.mubr.bf16.mxu0 %v752_v46 }
 0x1fe   : > { %v1310_v51 = vpop.eup %1309  ;;  %v731_v52 = vadd.f32 1.0, %v1308_v49  ;;  %1215 = vmatmul.mubr.bf16.gmra.mrb[24].mxu0 %v753_v44  ;;  %v746_v54 = vmul.f32 0.5, %v730_v48 }
 0x1ff   : > { %v729_v53 = vadd.f32 1.0, %v1310_v51  ;;  %v744_v35 = vmul.f32 0.5, %v728_v50 }
 0x200   : > { %v747_v55 = vmul.f32 0.5, %v731_v52 }
 0x201   : > { %v745_v56 = vmul.f32 0.5, %v729_v53 }
 0x202   : > { %v755_v57 = vpack.c.bf16 %v747_v55, %v746_v54 }
 0x203   : > { %v754_v58 = vpack.c.bf16 %v745_v56, %v744_v35 }
 0x205   : > { %1218 = vmatprep.mubr.bf16.mxu0 %v754_v58 }
 0x206   : > { %1219 = vmatmul.mubr.bf16.gmra.mrb[28].mxu0 %v755_v57 }
 0x2c1   : > { %v1208_v60 = vpop.f32.mrb[16].mxu0 }
 0x2c2   : > { %v870_v61 = vadd.f32 %v1208_v60, %v1529_v59  ;;  %v861_v62 = vpop.f32.mrb[17].mxu0 }
 0x2c3   : > { %v862_v63 = vadd.f32 %v1529_v59, %v861_v62  ;;  %v1209_v0 = vpop.f32.mrb[18].mxu0 }
 0x2c4   : > { %v926_v1 = vmul.f32 0.5, %v870_v61  ;;  %v873_v2 = vadd.f32 %v1209_v0, %v1529_v59  ;;  %v864_v3 = vpop.f32.mrb[19].mxu0 }
 0x2c5   : > { %v924_v4 = vmul.f32 0.5, %v862_v63  ;;  %v865_v5 = vadd.f32 %v1529_v59, %v864_v3 }
 0x2c6   : > { %1311 = vtanh.f32 %v926_v1  ;;  %v927_v6 = vmul.f32 0.5, %v873_v2 }
 0x2c7   : > { %1313 = vtanh.f32 %v924_v4  ;;  %v925_v7 = vmul.f32 0.5, %v865_v5 }
 0x2c8   : > { %1315 = vtanh.f32 %v927_v6 }
 0x2c9   : > { %1317 = vtanh.f32 %v925_v7  ;;  %v1212_v8 = vpop.f32.mrb[20].mxu0 }
 0x2ca   : > { %v886_v9 = vadd.f32 %v1212_v8, %v1529_v59  ;;  %v877_v10 = vpop.f32.mrb[21].mxu0 }
 0x2cb   : > { %v878_v11 = vadd.f32 %v1529_v59, %v877_v10  ;;  %v1213_v12 = vpop.f32.mrb[22].mxu0 }
 0x2cc   : > { %v930_v13 = vmul.f32 0.5, %v886_v9  ;;  %v889_v14 = vadd.f32 %v1213_v12, %v1529_v59  ;;  %v880_v15 = vpop.f32.mrb[23].mxu0 }
 0x2cd   : > { %v928_v16 = vmul.f32 0.5, %v878_v11  ;;  %v881_v17 = vadd.f32 %v1529_v59, %v880_v15 }
 0x2ce   : > { %1319 = vtanh.f32 %v930_v13  ;;  %v931_v19 = vmul.f32 0.5, %v889_v14 }
 0x2cf   : > { %1321 = vtanh.f32 %v928_v16  ;;  %v929_v20 = vmul.f32 0.5, %v881_v17 }
 0x2d0   : > { %v1312_v21 = vpop.eup %1311  ;;  %1323 = vtanh.f32 %v931_v19 }
 0x2d1   : > { %v1314_v22 = vpop.eup %1313  ;;  %v958_v23 = vadd.f32 1.0, %v1312_v21  ;;  %1325 = vtanh.f32 %v929_v20  ;;  %v1216_v24 = vpop.f32.mrb[24].mxu0 }
 0x2d2   : > { %v1316_v25 = vpop.eup %1315  ;;  %v956_v26 = vadd.f32 1.0, %v1314_v22  ;;  %v902_v27 = vadd.f32 %v1216_v24, %v1529_v59  ;;  %v893_v28 = vpop.f32.mrb[25].mxu0 }
 0x2d3   : > { %v1318_v29 = vpop.eup %1317  ;;  %v974_v30 = vmul.f32 0.5, %v958_v23  ;;  %v959_v31 = vadd.f32 1.0, %v1316_v25  ;;  %v894_v32 = vadd.f32 %v1529_v59, %v893_v28  ;;  %v1217_v33 = vpop.f32.mrb[26].mxu0 }
 0x2d4   : > { %v972_v34 = vmul.f32 0.5, %v956_v26  ;;  %v957_v36 = vadd.f32 1.0, %v1318_v29  ;;  %v934_v37 = vmul.f32 0.5, %v902_v27  ;;  %v905_v38 = vadd.f32 %v1217_v33, %v1529_v59  ;;  %v896_v39 = vpop.f32.mrb[27].mxu0 }
 0x2d5   : > { %990 = vst [vmem:[%s1544_s9 + $0x10] sm:$0xff] %v974_v30  ;;  %v975_v18 = vmul.f32 0.5, %v959_v31  ;;  %v932_v40 = vmul.f32 0.5, %v894_v32  ;;  %v897_v41 = vadd.f32 %v1529_v59, %v896_v39 }
 0x2d6   : > { %988 = vst [vmem:[%s1544_s9] sm:$0xff] %v972_v34  ;;  %v973_v42 = vmul.f32 0.5, %v957_v36  ;;  %1327 = vtanh.f32 %v934_v37  ;;  %v935_v43 = vmul.f32 0.5, %v905_v38 }
 0x2d7   : > { %991 = vst [vmem:[%s1544_s9 + $0x18] sm:$0xff] %v975_v18  ;;  %1329 = vtanh.f32 %v932_v40  ;;  %v933_v44 = vmul.f32 0.5, %v897_v41 }
 0x2d8   : > { %v1320_v45 = vpop.eup %1319  ;;  %989 = vst [vmem:[%s1544_s9 + $0x8] sm:$0xff] %v973_v42  ;;  %1331 = vtanh.f32 %v935_v43 }
 0x2d9   : > { %v1322_v46 = vpop.eup %1321  ;;  %v962_v47 = vadd.f32 1.0, %v1320_v45  ;;  %1333 = vtanh.f32 %v933_v44  ;;  %v1220_v48 = vpop.f32.mrb[28].mxu0 }
 0x2da   : > { %v1324_v49 = vpop.eup %1323  ;;  %v960_v50 = vadd.f32 1.0, %v1322_v46  ;;  %v918_v51 = vadd.f32 %v1220_v48, %v1529_v59  ;;  %v909_v52 = vpop.f32.mrb[29].mxu0 }
 0x2db   : > { %v1326_v53 = vpop.eup %1325  ;;  %v978_v54 = vmul.f32 0.5, %v962_v47  ;;  %v963_v55 = vadd.f32 1.0, %v1324_v49  ;;  %v910_v35 = vadd.f32 %v1529_v59, %v909_v52  ;;  %v1221_v56 = vpop.f32.mrb[30].mxu0 }
 0x2dc   : > { %v976_v57 = vmul.f32 0.5, %v960_v50  ;;  %v961_v58 = vadd.f32 1.0, %v1326_v53  ;;  %v938_v60 = vmul.f32 0.5, %v918_v51  ;;  %v921_v61 = vadd.f32 %v1221_v56, %v1529_v59  ;;  %v912_v62 = vpop.f32.mrb[31].mxu0 }
 0x2dd   : > { %994 = vst [vmem:[%s1544_s9 + $0x30] sm:$0xff] %v978_v54  ;;  %v979_v63 = vmul.f32 0.5, %v963_v55  ;;  %v936_v0 = vmul.f32 0.5, %v910_v35  ;;  %v913_v1 = vadd.f32 %v1529_v59, %v912_v62 }
 0x2de   : > { %992 = vst [vmem:[%s1544_s9 + $0x20] sm:$0xff] %v976_v57  ;;  %v977_v2 = vmul.f32 0.5, %v961_v58  ;;  %1335 = vtanh.f32 %v938_v60  ;;  %v939_v3 = vmul.f32 0.5, %v921_v61 }
 0x2df   : > { %995 = vst [vmem:[%s1544_s9 + $0x38] sm:$0xff] %v979_v63  ;;  %1337 = vtanh.f32 %v936_v0  ;;  %v937_v4 = vmul.f32 0.5, %v913_v1 }
 0x2e0   : > { %v1328_v5 = vpop.eup %1327  ;;  %993 = vst [vmem:[%s1544_s9 + $0x28] sm:$0xff] %v977_v2  ;;  %1339 = vtanh.f32 %v939_v3 }
 0x2e1   : > { %v1330_v6 = vpop.eup %1329  ;;  %v966_v7 = vadd.f32 1.0, %v1328_v5  ;;  %1341 = vtanh.f32 %v937_v4 }
 0x2e2   : > { %v1332_v8 = vpop.eup %1331  ;;  %v964_v9 = vadd.f32 1.0, %v1330_v6 }
 0x2e3   : > { %v1334_v59 = vpop.eup %1333  ;;  %v982_v10 = vmul.f32 0.5, %v966_v7  ;;  %v967_v11 = vadd.f32 1.0, %v1332_v8 }
 0x2e4   : > { %v980_v12 = vmul.f32 0.5, %v964_v9  ;;  %v965_v13 = vadd.f32 1.0, %v1334_v59 }
 0x2e5   : > { %998 = vst [vmem:[%s1544_s9 + $0x50] sm:$0xff] %v982_v10  ;;  %v983_v14 = vmul.f32 0.5, %v967_v11 }
 0x2e6   : > { %996 = vst [vmem:[%s1544_s9 + $0x40] sm:$0xff] %v980_v12  ;;  %v981_v15 = vmul.f32 0.5, %v965_v13 }
 0x2e7   : > { %999 = vst [vmem:[%s1544_s9 + $0x58] sm:$0xff] %v983_v14 }
 0x2e8   : > { %v1336_v16 = vpop.eup %1335  ;;  %997 = vst [vmem:[%s1544_s9 + $0x48] sm:$0xff] %v981_v15 }
 0x2e9   : > { %v1338_v17 = vpop.eup %1337  ;;  %v970_v19 = vadd.f32 1.0, %v1336_v16 }
 0x2ea   : > { %v1340_v20 = vpop.eup %1339  ;;  %v968_v21 = vadd.f32 1.0, %v1338_v17 }
 0x2eb   : > { %v1342_v22 = vpop.eup %1341  ;;  %v986_v23 = vmul.f32 0.5, %v970_v19  ;;  %v971_v24 = vadd.f32 1.0, %v1340_v20 }
 0x2ec   : > { %v984_v25 = vmul.f32 0.5, %v968_v21  ;;  %v969_v26 = vadd.f32 1.0, %v1342_v22 }
 0x2ed   : > { %1002 = vst [vmem:[%s1544_s9 + $0x70] sm:$0xff] %v986_v23  ;;  %v987_v27 = vmul.f32 0.5, %v971_v24 }
 0x2ee   : > { %1000 = vst [vmem:[%s1544_s9 + $0x60] sm:$0xff] %v984_v25  ;;  %v985_v28 = vmul.f32 0.5, %v969_v26 }
 0x2ef   : > { %1003 = vst [vmem:[%s1544_s9 + $0x78] sm:$0xff] %v987_v27 }
 0x2f0   : > { %1001 = vst [vmem:[%s1544_s9 + $0x68] sm:$0xff] %v985_v28 }
 0x2f1 PF: > { %s17_s24 = sadd.s32 1, %s1349_s24  }
 0x2f2   : > { %p14_p4 = scmp.ge.s32.totalorder %s17_s24, 6  }
 0x2f4   :  { %16 = sbr.rel (!%p14_p4) target bundleno = 1 (0x1), region = 78 }

</bundles_post_ra>
